<compile_context>
chip_gen: v6e
topology: v6e:2x2x1
jax: 0.10.0
libtpu: 0.0.40
codegen_flags: <defaults>
</compile_context>

<pallas_src>
import jax
import jax.numpy as jnp
from jax.experimental import pallas as pl
from jax.experimental.pallas import tpu as pltpu

LANE = 128     # TPU vreg lane width
SUBLANE = 8    # TPU vreg sublane count (f32)


def _round_up(n, m):
    return pl.cdiv(n, m) * m


# ----------------------------------------------------------------------------
# Kernel: one batch tile through all three layers.
# ----------------------------------------------------------------------------
def decoder_kernel(x_ref, w1_ref, b1_ref, w2_ref, b2_ref, w3_ref, b3_ref, o_ref):
    # Matmuls accumulate in f32 on the MXU; bias+ReLU run in f32 on the VPU and
    # are cast back to the (bf16) weight dtype only to feed the next matmul.
    h1 = jnp.dot(x_ref[...], w1_ref[...], preferred_element_type=jnp.float32)
    h1 = jnp.maximum(h1 + b1_ref[...], 0.0).astype(w2_ref.dtype)

    h2 = jnp.dot(h1, w2_ref[...], preferred_element_type=jnp.float32)
    h2 = jnp.maximum(h2 + b2_ref[...], 0.0).astype(w3_ref.dtype)

    out = jnp.dot(h2, w3_ref[...], preferred_element_type=jnp.float32) + b3_ref[...]
    o_ref[...] = out.astype(o_ref.dtype)


# ----------------------------------------------------------------------------
# Parameter preparation: lane-pad hidden dims, cast weights to compute dtype.
# ----------------------------------------------------------------------------
def prepare_decoder_params(params, compute_dtype=jnp.bfloat16):
    w1, b1 = params["w1"], params["b1"]
    w2, b2 = params["w2"], params["b2"]
    w3, b3 = params["w3"], params["b3"]

    H1 = w1.shape[1]
    H2 = w2.shape[1]
    H1p = _round_up(H1, LANE)
    H2p = _round_up(H2, LANE)

    # Zero-pad hidden dims to the 128-lane width: free FLOPs on the MXU (K is
    # padded internally anyway) and lane-dense vregs for bias+ReLU.  Numerically
    # identical: padded h columns are ReLU(0+0)=0 and multiply zero weight rows.
    w1p = jnp.pad(w1, ((0, 0), (0, H1p - H1))).astype(compute_dtype)
    b1p = jnp.pad(b1, ((0, 0), (0, H1p - H1))).astype(jnp.float32)
    w2p = jnp.pad(w2, ((0, H1p - H1), (0, H2p - H2))).astype(compute_dtype)
    b2p = jnp.pad(b2, ((0, 0), (0, H2p - H2))).astype(jnp.float32)
    w3p = jnp.pad(w3, ((0, H2p - H2), (0, 0))).astype(compute_dtype)
    b3p = b3.astype(jnp.float32)

    return {"w1": w1p, "b1": b1p, "w2": w2p, "b2": b2p, "w3": w3p, "b3": b3p}


# ----------------------------------------------------------------------------
# Forward wrapper.
# ----------------------------------------------------------------------------
def decoder_forward(x, prepped, *, tile_b=None):
    """x: (B, latent_space_size). prepped: output of prepare_decoder_params."""
    w1, b1 = prepped["w1"], prepped["b1"]
    w2, b2 = prepped["w2"], prepped["b2"]
    w3, b3 = prepped["w3"], prepped["b3"]

    B, L = x.shape
    H1 = w1.shape[1]
    H2 = w2.shape[1]
    D = w3.shape[1]
    compute_dtype = w1.dtype
    out_dtype = x.dtype  # keep the module's output dtype (f32 for f32 input)

    # ---- batch-tile selection ------------------------------------------------
    # Large tiles keep the DMA pipeline efficient and stream a full M dimension
    # through the MXU; cap at 512 and keep >= 2 grid steps when the batch allows
    # it so ("parallel",) can shard across v7x's two TensorCores.
    if tile_b is None:
        tile_b = max(SUBLANE, min(512, _round_up(pl.cdiv(B, 2), SUBLANE)))
    else:
        tile_b = max(SUBLANE, _round_up(tile_b, SUBLANE))

    # ---- pad batch to a tile multiple (supports any B, no assert) ------------
    Bp = _round_up(B, tile_b)
    if Bp != B:
        x = jnp.pad(x, ((0, Bp - B), (0, 0)))
    # Stream activations in the compute dtype (bf16 by default): halves x HBM traffic.
    x = x.astype(compute_dtype)

    grid = (Bp // tile_b,)

    const = lambda shape: pl.BlockSpec(shape, lambda i: (0, 0))  # resident block

    flops = 2 * Bp * (L * H1 + H1 * H2 + H2 * D)
    bytes_accessed = (
        x.size * x.dtype.itemsize
        + sum(a.size * a.dtype.itemsize for a in (w1, b1, w2, b2, w3, b3))
        + Bp * D * out_dtype.itemsize
    )

    out = pl.pallas_call(
        decoder_kernel,
        out_shape=jax.ShapeDtypeStruct((Bp, D), out_dtype),
        grid_spec=pltpu.PrefetchScalarGridSpec(
            num_scalar_prefetch=0,
            grid=grid,
            in_specs=[
                pl.BlockSpec((tile_b, L), lambda i: (i, 0)),   # x batch tile
                const((L, H1)), const((1, H1)),                # layer 1 (resident)
                const((H1, H2)), const((1, H2)),               # layer 2 (resident)
                const((H2, D)), const((1, D)),                 # layer 3 (resident)
            ],
            out_specs=pl.BlockSpec((tile_b, D), lambda i: (i, 0)),
        ),
        compiler_params=pltpu.CompilerParams(
            dimension_semantics=("parallel",),
            vmem_limit_bytes=32 * 1024 * 1024,
        ),
        cost_estimate=pl.CostEstimate(
            flops=flops, transcendentals=0, bytes_accessed=bytes_accessed),
    )(x, w1, b1, w2, b2, w3, b3)

    return out[:B] if Bp != B else out


# ----------------------------------------------------------------------------
# Init (mimics nn.Linear's U(-1/sqrt(fan_in), 1/sqrt(fan_in))) and reference.
# Weights stored as (in_features, out_features) so the layer is x @ W + b.
# ----------------------------------------------------------------------------
def init_decoder_params(key, input_size, latent_space_size):
    h1 = input_size // 4
    h2 = input_size // 2
    ks = jax.random.split(key, 6)

    def lin(kw, kb, fan_in, fan_out):
        bound = 1.0 / (fan_in ** 0.5)
        w = jax.random.uniform(kw, (fan_in, fan_out), jnp.float32, -bound, bound)
        b = jax.random.uniform(kb, (1, fan_out), jnp.float32, -bound, bound)
        return w, b

    w1, b1 = lin(ks[0], ks[1], latent_space_size, h1)
    w2, b2 = lin(ks[2], ks[3], h1, h2)
    w3, b3 = lin(ks[4], ks[5], h2, input_size)
    return {"w1": w1, "b1": b1, "w2": w2, "b2": b2, "w3": w3, "b3": b3}


def decoder_reference(x, params):
    """Pure-JAX f32 reference matching the PyTorch forward."""
    h = jnp.maximum(x @ params["w1"] + params["b1"], 0.0)
    h = jnp.maximum(h @ params["w2"] + params["b2"], 0.0)
    return h @ params["w3"] + params["b3"]


if __name__ == "__main__":
    # Small shapes consistent with the module: latent 32 -> 64 -> 128 -> 256.
    input_size = 256
    latent_space_size = 32
    batch = 12  # deliberately NOT a multiple of the tile -> exercises batch padding

    key = jax.random.PRNGKey(0)
    kx, kp = jax.random.split(key)
    x = jax.random.normal(kx, (batch, latent_space_size), jnp.float32)
    params = init_decoder_params(kp, input_size, latent_space_size)
    ref = decoder_reference(x, params)

    fwd = jax.jit(decoder_forward)

    # f32 streams: matches the PyTorch module numerically (tight tolerance).
    p_f32 = prepare_decoder_params(params, compute_dtype=jnp.float32)
    out_f32 = jax.block_until_ready(fwd(x, p_f32))
    assert out_f32.shape == (batch, input_size)
    assert jnp.allclose(out_f32, ref, atol=1e-4, rtol=1e-4), "f32 mismatch vs reference"

    # bf16 streams (recommended fast path): f32 accumulation, looser tolerance.
    p_bf16 = prepare_decoder_params(params, compute_dtype=jnp.bfloat16)
    out_bf16 = jax.block_until_ready(fwd(x, p_bf16))
    assert out_bf16.shape == (batch, input_size)
    assert jnp.allclose(out_bf16.astype(jnp.float32), ref, atol=5e-2, rtol=5e-2), \
        "bf16 mismatch vs reference"

    print("KERNEL_OK")
</pallas_src>

<mosaic_0001>
module attributes {stable_mosaic.version = 11 : i64} {
  func.func @decoder_kernel(%arg0: i32, %arg1: memref<8x32xf32, #tpu.memory_space<vmem>>, %arg2: memref<32x128xf32, #tpu.memory_space<vmem>>, %arg3: memref<1x128xf32, #tpu.memory_space<vmem>>, %arg4: memref<128x128xf32, #tpu.memory_space<vmem>>, %arg5: memref<1x128xf32, #tpu.memory_space<vmem>>, %arg6: memref<128x256xf32, #tpu.memory_space<vmem>>, %arg7: memref<1x256xf32, #tpu.memory_space<vmem>>, %arg8: memref<8x256xf32, #tpu.memory_space<vmem>>) attributes {dimension_semantics = [#tpu.dimension_semantics<parallel>], iteration_bounds = array<i64: 2>, scalar_prefetch = 0 : i64, scratch_operands = 0 : i64, tpu.core_type = #tpu.core_type<tc>, window_params = [{transform_indices = @transform_0, window_bounds = array<i64: 8, 32>}, {pipeline_mode = #tpu.pipeline_mode<synchronous>, transform_indices = @transform_1, window_bounds = array<i64: 32, 128>}, {pipeline_mode = #tpu.pipeline_mode<synchronous>, transform_indices = @transform_2, window_bounds = array<i64: 1, 128>}, {pipeline_mode = #tpu.pipeline_mode<synchronous>, transform_indices = @transform_3, window_bounds = array<i64: 128, 128>}, {pipeline_mode = #tpu.pipeline_mode<synchronous>, transform_indices = @transform_4, window_bounds = array<i64: 1, 128>}, {pipeline_mode = #tpu.pipeline_mode<synchronous>, transform_indices = @transform_5, window_bounds = array<i64: 128, 256>}, {pipeline_mode = #tpu.pipeline_mode<synchronous>, transform_indices = @transform_6, window_bounds = array<i64: 1, 256>}, {transform_indices = @transform_7, window_bounds = array<i64: 8, 256>}]} {
    %c0 = arith.constant 0 : index
    %c0_0 = arith.constant 0 : index
    %0 = vector.load %arg1[%c0, %c0_0] : memref<8x32xf32, #tpu.memory_space<vmem>>, vector<8x32xf32>
    %c0_1 = arith.constant 0 : index
    %c0_2 = arith.constant 0 : index
    %1 = vector.load %arg2[%c0_1, %c0_2] : memref<32x128xf32, #tpu.memory_space<vmem>>, vector<32x128xf32>
    %cst = arith.constant dense<0.000000e+00> : vector<8x128xf32>
    %2 = tpu.matmul %0, %1, %cst {dimension_numbers = #tpu.dot_dimension_numbers<[1], [0], [0], [1], [0, 0, 1, 1], [], []>} : vector<8x32xf32>, vector<32x128xf32>, vector<8x128xf32> -> vector<8x128xf32>
    %c0_3 = arith.constant 0 : index
    %c0_4 = arith.constant 0 : index
    %3 = vector.load %arg3[%c0_3, %c0_4] : memref<1x128xf32, #tpu.memory_space<vmem>>, vector<1x128xf32>
    %4 = vector.broadcast %3 : vector<1x128xf32> to vector<8x128xf32>
    %5 = arith.addf %2, %4 : vector<8x128xf32>
    %cst_5 = arith.constant 0.000000e+00 : f32
    %6 = vector.broadcast %cst_5 : f32 to vector<8x128xf32>
    %7 = arith.maximumf %5, %6 : vector<8x128xf32>
    %c0_6 = arith.constant 0 : index
    %c0_7 = arith.constant 0 : index
    %8 = vector.load %arg4[%c0_6, %c0_7] : memref<128x128xf32, #tpu.memory_space<vmem>>, vector<128x128xf32>
    %cst_8 = arith.constant dense<0.000000e+00> : vector<8x128xf32>
    %9 = tpu.matmul %7, %8, %cst_8 {dimension_numbers = #tpu.dot_dimension_numbers<[1], [0], [0], [1], [0, 0, 1, 1], [], []>} : vector<8x128xf32>, vector<128x128xf32>, vector<8x128xf32> -> vector<8x128xf32>
    %c0_9 = arith.constant 0 : index
    %c0_10 = arith.constant 0 : index
    %10 = vector.load %arg5[%c0_9, %c0_10] : memref<1x128xf32, #tpu.memory_space<vmem>>, vector<1x128xf32>
    %11 = vector.broadcast %10 : vector<1x128xf32> to vector<8x128xf32>
    %12 = arith.addf %9, %11 : vector<8x128xf32>
    %cst_11 = arith.constant 0.000000e+00 : f32
    %13 = vector.broadcast %cst_11 : f32 to vector<8x128xf32>
    %14 = arith.maximumf %12, %13 : vector<8x128xf32>
    %c0_12 = arith.constant 0 : index
    %c0_13 = arith.constant 0 : index
    %15 = vector.load %arg6[%c0_12, %c0_13] : memref<128x256xf32, #tpu.memory_space<vmem>>, vector<128x256xf32>
    %cst_14 = arith.constant dense<0.000000e+00> : vector<8x256xf32>
    %16 = tpu.matmul %14, %15, %cst_14 {dimension_numbers = #tpu.dot_dimension_numbers<[1], [0], [0], [1], [0, 0, 1, 1], [], []>} : vector<8x128xf32>, vector<128x256xf32>, vector<8x256xf32> -> vector<8x256xf32>
    %c0_15 = arith.constant 0 : index
    %c0_16 = arith.constant 0 : index
    %17 = vector.load %arg7[%c0_15, %c0_16] : memref<1x256xf32, #tpu.memory_space<vmem>>, vector<1x256xf32>
    %18 = vector.broadcast %17 : vector<1x256xf32> to vector<8x256xf32>
    %19 = arith.addf %16, %18 : vector<8x256xf32>
    %c0_17 = arith.constant 0 : index
    %c0_18 = arith.constant 0 : index
    %20 = vector.load %arg8[%c0_17, %c0_18] : memref<8x256xf32, #tpu.memory_space<vmem>>, vector<8x256xf32>
    tpu.vector_store %arg8[%c0_17, %c0_18], %19 {strides = array<i32>} : memref<8x256xf32, #tpu.memory_space<vmem>>, vector<8x256xf32>,
    return
  }
  func.func @transform_0(%arg0: i32) -> (i32, i32) {
    %c0_i32 = arith.constant 0 : i32
    %c0_i32_0 = arith.constant 0 : i32
    return %arg0, %c0_i32 : i32, i32
  }
  func.func @transform_1(%arg0: i32) -> (i32, i32) {
    %c0_i32 = arith.constant 0 : i32
    %c0_i32_0 = arith.constant 0 : i32
    %c0_i32_1 = arith.constant 0 : i32
    return %c0_i32, %c0_i32_0 : i32, i32
  }
  func.func @transform_2(%arg0: i32) -> (i32, i32) {
    %c0_i32 = arith.constant 0 : i32
    %c0_i32_0 = arith.constant 0 : i32
    %c0_i32_1 = arith.constant 0 : i32
    return %c0_i32, %c0_i32_0 : i32, i32
  }
  func.func @transform_3(%arg0: i32) -> (i32, i32) {
    %c0_i32 = arith.constant 0 : i32
    %c0_i32_0 = arith.constant 0 : i32
    %c0_i32_1 = arith.constant 0 : i32
    return %c0_i32, %c0_i32_0 : i32, i32
  }
  func.func @transform_4(%arg0: i32) -> (i32, i32) {
    %c0_i32 = arith.constant 0 : i32
    %c0_i32_0 = arith.constant 0 : i32
    %c0_i32_1 = arith.constant 0 : i32
    return %c0_i32, %c0_i32_0 : i32, i32
  }
  func.func @transform_5(%arg0: i32) -> (i32, i32) {
    %c0_i32 = arith.constant 0 : i32
    %c0_i32_0 = arith.constant 0 : i32
    %c0_i32_1 = arith.constant 0 : i32
    return %c0_i32, %c0_i32_0 : i32, i32
  }
  func.func @transform_6(%arg0: i32) -> (i32, i32) {
    %c0_i32 = arith.constant 0 : i32
    %c0_i32_0 = arith.constant 0 : i32
    %c0_i32_1 = arith.constant 0 : i32
    return %c0_i32, %c0_i32_0 : i32, i32
  }
  func.func @transform_7(%arg0: i32) -> (i32, i32) {
    %c0_i32 = arith.constant 0 : i32
    %c0_i32_0 = arith.constant 0 : i32
    return %arg0, %c0_i32 : i32, i32
  }
}

</mosaic_0001>

<bundles_post_ra>
// kernel: decoder_forward.1
= control target key start
LH: loop header
LB: loop body
LE: loop exit
PB: predicated region body
PF: predicated region fallthrough
CT: control target
= control target key end

     0   :  { %12 = vsyncpa [#allocation3], 0  ;;  %s1194_s0 = inlined_call_operand.vmem [shape: f32[16,32], index: 0, kind: input, shape index: {}]   ;;  %s1195_s1 = inlined_call_operand.vmem [shape: f32[32,128], index: 1, kind: input, shape index: {}]   ;;  %s1196_s2 = inlined_call_operand.vmem [shape: f32[1,128], index: 2, kind: input, shape index: {}]   ;;  %s1197_s3 = inlined_call_operand.hbm [shape: f32[128,128], index: 3, kind: input, shape index: {}]   ;;  %s1198_s4 = inlined_call_operand.vmem [shape: f32[1,128], index: 4, kind: input, shape index: {}]   ;;  %s1199_s5 = inlined_call_operand.hbm [shape: f32[128,256], index: 5, kind: input, shape index: {}]   ;;  %s1200_s6 = inlined_call_operand.vmem [shape: f32[1,256], index: 6, kind: input, shape index: {}]   ;;  %s1201_s7 = inlined_call_operand.hbm [shape: f32[16,256], index: 7, kind: output, shape index: {}]  }
   0x1   :  { %13 = vsyncpa [#allocation6], 0 }
   0x2   :  { %14 = vsyncpa [#allocation4], 0 }
   0x3   :  { %16 = vsyncpa [#allocation4 + $0x1], 0  ;;  %s1022_s24 = smov 0   ;;  %s1024_s25 = smov 0  }
   0x4   :  { %s1026_s26 = smov 0   ;;  %s1028_s27 = smov 0  }
   0x5 LB: > { %s1043_s28 = sadd.s32 4294967295, %s971_s27   ;;  %s698_s29 = sadd.s32 4294967294, %s971_s27   ;;  %s971_s27 = sphi %s1028_s27, %s1215_s27   ;;  %s967_s26 = sphi %s1026_s26, %s1214_s26   ;;  %s963_s25 = sphi %s1024_s25, %s1213_s25   ;;  %s959_s24 = sphi %s1022_s24, %s1212_s24  }
   0x6   : > { %s1047_s30 = sadd.s32 1, %s971_s27   ;;  %s181_s8 = sadd.s32 1, %s967_s26 }
   0x7   : > { %s178_s9 = ssub.s32 %s971_s27, %s1047_s30  ;;  %p191_p0 = scmp.ne.s32.totalorder %s967_s26, %s963_s25 }
   0x8   : > { %p179_p1 = scmp.eq.s32.totalorder %s178_s9, 0  ;;  %p192_p2 = scmp.eq.s32.totalorder %s1043_s28, 1 }
   0x9   : > { %p197_p3 = scmp.ne.s32.totalorder %s963_s25, %s959_s24  ;;  %p198_p4 = scmp.eq.s32.totalorder %s698_s29, 1 }
   0xa   : > { %s1058_s10 = scalar_select %p179_p1, %s967_s26, %s181_s8  }
   0xb   : > { %p1060_p5 = por %p192_p2, %p191_p0  ;;  %p1064_p6 = por %p198_p4, %p197_p3 }
   0xc   : > { %p699_p7 = scmp.ge.s32.totalorder %s971_s27, 1  ;;  %p205_p8 = scmp.lt.s32.totalorder %s971_s27, 3 }
   0xd   : > { %s1204_s12 = scalar_select %p1064_p6, 1, 0 }
   0xe   : > { %p1202_p9 = scmp.eq.s32.totalorder %s1043_s28, 0  ;;  %p1071_p10 = pnand %p699_p7, %p205_p8 }
   0xf   : > { %s973_s14 = smov [#allocation2]   ;;  %s974_s17 = smov [#allocation5]  }
  0x10   : > { %s223_s15 = sshll.u32 %s973_s14, 4  ;;  %p795_p11 = pneg %p1071_p10  ;;  %s224_s15 = int_to_ptr.vmem [resolvable:$true] %s223_s15 }
  0x11   : > { %s239_s18 = sshll.u32 %s974_s17, 4  ;;  %s862_s19 = scalar_lea.vmem %s224_s15, 2048  ;;  %s240_s18 = int_to_ptr.vmem [resolvable:$true] %s239_s18 }
  0x12   : > { %p1079_p12 = pnand %p1202_p9, %p795_p11  ;;  %p863_p0 = scmp.ne.s32.totalorder %s224_s15, %s862_s19 }
  0x13   : > { %p870_p3 = scmp.lt.s32.totalorder %s224_s15, %s224_s15  ;;  %p871_p4 = scmp.lt.s32.totalorder %s862_s19, %s862_s19 }
  0x14   : > { %p853_p13 = pneg %p1079_p12 }
  0x15   : > { %p872_p7 = por %p871_p4, %p870_p3 }
  0x16   : > { %p865_p1 = pnand %p863_p0, %p853_p13 }
  0x18   : > { %p866_p2 = pneg %p865_p1 }
  0x1a   : > { %p873_p8 = pnand %p872_p7, %p866_p2 }
  0x1c   : > { %876 = shalt.err (!%p873_p8)
}
  0x1d   : > { %s975_s20 = smov 128   ;;  %s976_s21 = smov 8  }
  0x1e   : > { %798 = dma.hbm_to_vmem [thread:$0]  (!%p1079_p12), %s1197_s3, 2048, %s224_s15, [#allocation3], %s975_s20, %s975_s20, %s976_s21  }
  0x1f   : > { %s888_s29 = scalar_lea.vmem %s240_s18, 4096  ;;  %p896_p9 = scmp.lt.s32.totalorder %s240_s18, %s240_s18 }
  0x20   : > { %p889_p11 = scmp.ne.s32.totalorder %s240_s18, %s888_s29  ;;  %p897_p6 = scmp.lt.s32.totalorder %s888_s29, %s888_s29 }
  0x22   : > { %p891_p0 = pnand %p889_p11, %p853_p13  ;;  %p898_p3 = por %p897_p6, %p896_p9 }
  0x24   : > { %p892_p1 = pneg %p891_p0 }
  0x26   : > { %p899_p2 = pnand %p898_p3, %p892_p1 }
  0x28   : > { %902 = shalt.err (!%p899_p2)
}
  0x29   : > { %s977_s8 = smov 256   ;;  %s978_s9 = smov 16  }
  0x2a   : > { %801 = dma.hbm_to_vmem [thread:$0]  (!%p1079_p12), %s1199_s5, 4096, %s240_s18, [#allocation6], %s977_s8, %s977_s8, %s978_s9  }
  0x2b   : > { %265 = sbr.rel (%p1071_p10) target bundleno = 666 (0x29a), region = 48  ;;  %p1207_p4 = scmp.eq.s32.totalorder (!%p1071_p10), %s1043_s28, 0 }
  0x30   : > { %946 = dma.done.wait (%p1207_p4), [#allocation3], 2048   ;;  %p1208_p13 = pmov %p1207_p4 }
  0x31   : > { %p1209_p6 = pmov %p1207_p4 }
  0x32   : > { %948 = vsyncadd (%p1208_p13), [#allocation3], 4294965248 }
  0x33   : > { %950 = dma.done.wait (%p1209_p6), [#allocation6], 4096   ;;  %p1210_p9 = pmov %p1207_p4 }
  0x34   : > { %p300_p7 = scmp.lt.s32.totalorder %s1043_s28, 1  ;;  %v979_v0 = vmov 0.0   ;;  %vm980_vm0 = vmmov 0   ;;  %v308_v1 = vld [vmem:[%s1195_s1 + $0x18] sm:$0xff]  ;;  %v307_v2 = vld [vmem:[%s1195_s1 + $0x10] sm:$0xff]  ;;  %v306_v4 = vld [vmem:[%s1195_s1 + $0x8] sm:$0xff] }
  0x35   : > { %952 = vsyncadd (%p1210_p9), [#allocation6], 4294963200  ;;  %739 = vmatprep.subr.mxu0 %v979_v0  ;;  %747 = vmatprep.mubr.msk.f32.mxu0 %vm980_vm0, %v979_v0  ;;  %v406_v3 = vld [vmem:[#allocation2 + $0x78] sm:$0xff]  ;;  %v405_v5 = vld [vmem:[#allocation2 + $0x70] sm:$0xff]  ;;  %vm316_vm1 = vcmask 261120   ;;  %s297_s18 = sand.u32 1, %s963_s25  }
  0x36   : > { %s301_s13 = scalar_select %p300_p7, %s1043_s28, 1  ;;  %750 = vmatprep.subr.mxu1 %v979_v0  ;;  %782 = vmatprep.mubr.msk.f32.mxu1 %vm980_vm0, %v979_v0  ;;  %v404_v6 = vld [vmem:[#allocation2 + $0x68] sm:$0xff]  ;;  %v305_v7 = vld [vmem:[%s1195_s1] sm:$0xff]  ;;  %v402_v10 = vld [vmem:[#allocation2 + $0x58] sm:$0xff] }
  0x37   : > { %740 = vmatpush3.msra.mxu0 %v308_v1  ;;  %751 = vmatpush3.msra.mxu1 %v406_v3  ;;  %v403_v9 = vld [vmem:[#allocation2 + $0x60] sm:$0xff]  ;;  %v401_v11 = vld [vmem:[#allocation2 + $0x50] sm:$0xff]  ;;  %v400_v12 = vld [vmem:[#allocation2 + $0x48] sm:$0xff]  ;;  %s706_s19 = sshll.u32 %s297_s18, 4  ;;  %s716_s22 = sshll.u32 %s1043_s28, 8 }
  0x38   : > { %s707_s15 = sshll.u32 %s301_s13, 3  ;;  %741 = vmatprep.subr.mxu0 %v979_v0  ;;  %752 = vmatprep.subr.mxu1 %v979_v0  ;;  %v399_v13 = vld [vmem:[#allocation2 + $0x40] sm:$0xff]  ;;  %v398_v14 = vld [vmem:[#allocation2 + $0x38] sm:$0xff]  ;;  %v397_v15 = vld [vmem:[#allocation2 + $0x30] sm:$0xff]  ;;  %s299_s23 = scalar_lea.vmem [#allocation7], %s706_s19 }
  0x39   : > { %s303_s8 = scalar_lea.vmem %s1194_s0, %s707_s15  ;;  %742 = vmatpush3.msra.mxu0 %v307_v2  ;;  %753 = vmatpush3.msra.mxu1 %v405_v5  ;;  %v396_v16 = vld [vmem:[#allocation2 + $0x28] sm:$0xff]  ;;  %v395_v17 = vld [vmem:[#allocation2 + $0x20] sm:$0xff]  ;;  %v394_v18 = vld [vmem:[#allocation2 + $0x18] sm:$0xff]  ;;  %s617_s29 = sshll.u32 %s299_s23, 4  ;;  %s618_s29 = int_to_ptr.vmem [resolvable:$true] %s617_s29 }
  0x3a   : > { %743 = vmatprep.subr.mxu0 %v979_v0  ;;  %v304_v8 = vld [vmem:[%s303_s8] sm:$0xff]  ;;  %754 = vmatprep.subr.mxu1 %v979_v0  ;;  %v393_v19 = vld [vmem:[#allocation2 + $0x10] sm:$0xff]  ;;  %v392_v20 = vld [vmem:[#allocation2 + $0x8] sm:$0xff]  ;;  %s615_s14 = scalar_lea.hbm %s1201_s7, %s716_s22  ;;  %s603_s17 = scalar_lea.sflag [#allocation4], %s297_s18 }
  0x3b   : > { %744 = vmatpush3.msra.mxu0 %v306_v4  ;;  %755 = vmatpush3.msra.mxu1 %v404_v6  ;;  %v391_v21 = vld [vmem:[#allocation2] sm:$0xff]  ;;  %v516_v22 = vld [vmem:[#allocation5 + $0xf8] sm:$0xff]  ;;  %v515_v23 = vld [vmem:[#allocation5 + $0xf0] sm:$0xff]  ;;  %s903_s13 = scalar_lea.vmem %s618_s29, 256  ;;  %s981_s15 = smov [#allocation7]  }
  0x3c   : > { %745 = vmatprep.subr.mxu0 %v979_v0  ;;  %756 = vmatprep.subr.mxu1 %v979_v0  ;;  %v514_v24 = vld [vmem:[#allocation5 + $0xe8] sm:$0xff]  ;;  %v513_v25 = vld [vmem:[#allocation5 + $0xe0] sm:$0xff]  ;;  %v512_v26 = vld [vmem:[#allocation5 + $0xd8] sm:$0xff]  ;;  %p904_p10 = scmp.ne.s32.totalorder %s618_s29, %s903_s13  ;;  %s907_s28 = sshll.u32 %s981_s15, 4  ;;  %s908_s28 = int_to_ptr.vmem [resolvable:$false] %s907_s28 }
  0x3d   : > { %746 = vmatpush3.msra.mxu0 %v305_v7  ;;  %757 = vmatpush3.msra.mxu1 %v403_v9  ;;  %v511_v27 = vld [vmem:[#allocation5 + $0xd0] sm:$0xff]  ;;  %v510_v28 = vld [vmem:[#allocation5 + $0xc8] sm:$0xff]  ;;  %v509_v29 = vld [vmem:[#allocation5 + $0xc0] sm:$0xff]  ;;  %s909_s16 = scalar_lea.vmem %s908_s28, 512  ;;  %p910_p11 = scmp.lt.s32.totalorder %s618_s29, %s908_s28 }
  0x3e   : > { %748 = vmatmul.mubr.msk.f32.vlgmr.msra.gmra.mxu0 %vm316_vm1, %v304_v8  ;;  %758 = vmatprep.subr.mxu1 %v979_v0  ;;  %v508_v30 = vld [vmem:[#allocation5 + $0xb8] sm:$0xff]  ;;  %v507_v31 = vld [vmem:[#allocation5 + $0xb0] sm:$0xff]  ;;  %v506_v32 = vld [vmem:[#allocation5 + $0xa8] sm:$0xff]  ;;  %p905_p12 = pnand %p904_p10, %p1060_p5  ;;  %p911_p0 = scmp.lt.s32.totalorder %s909_s16, %s903_s13 }
  0x3f   : > { %593 = vmatprep.mubr.f32.mxu0 %v979_v0  ;;  %759 = vmatpush3.msra.mxu1 %v402_v10  ;;  %v505_v33 = vld [vmem:[#allocation5 + $0xa0] sm:$0xff]  ;;  %v504_v34 = vld [vmem:[#allocation5 + $0x98] sm:$0xff]  ;;  %v503_v35 = vld [vmem:[#allocation5 + $0x90] sm:$0xff] }
  0x40   : > { %760 = vmatprep.subr.mxu1 %v979_v0  ;;  %529 = vmatprep.subr.mxu0 %v516_v22  ;;  %v502_v36 = vld [vmem:[#allocation5 + $0x88] sm:$0xff]  ;;  %v501_v37 = vld [vmem:[#allocation5 + $0x80] sm:$0xff]  ;;  %v500_v38 = vld [vmem:[#allocation5 + $0x78] sm:$0xff]  ;;  %p906_p8 = pneg %p905_p12  ;;  %p912_p1 = por %p911_p0, %p910_p11 }
  0x41   : > { %761 = vmatpush3.msra.mxu1 %v401_v11  ;;  %530 = vmatpush1.msra.mxu0 %v515_v23  ;;  %v499_v39 = vld [vmem:[#allocation5 + $0x70] sm:$0xff]  ;;  %v498_v40 = vld [vmem:[#allocation5 + $0x68] sm:$0xff]  ;;  %v497_v41 = vld [vmem:[#allocation5 + $0x60] sm:$0xff] }
  0x42   : > { %762 = vmatprep.subr.mxu1 %v979_v0  ;;  %531 = vmatprep.subr.mxu0 %v514_v24  ;;  %v496_v42 = vld [vmem:[#allocation5 + $0x58] sm:$0xff]  ;;  %v495_v43 = vld [vmem:[#allocation5 + $0x50] sm:$0xff]  ;;  %v494_v44 = vld [vmem:[#allocation5 + $0x48] sm:$0xff]  ;;  %p913_p3 = pnand %p912_p1, %p906_p8 }
  0x43   : > { %763 = vmatpush3.msra.mxu1 %v400_v12  ;;  %532 = vmatpush1.msra.mxu0 %v513_v25  ;;  %v493_v45 = vld [vmem:[#allocation5 + $0x40] sm:$0xff]  ;;  %v492_v46 = vld [vmem:[#allocation5 + $0x38] sm:$0xff]  ;;  %v491_v47 = vld [vmem:[#allocation5 + $0x30] sm:$0xff] }
  0x44   : > { %764 = vmatprep.subr.mxu1 %v979_v0  ;;  %533 = vmatprep.subr.mxu0 %v512_v26  ;;  %v490_v48 = vld [vmem:[#allocation5 + $0x28] sm:$0xff]  ;;  %v708_v49 = vld [vmem:[%s1196_s2] ss:$0 sm:$0xff]  ;;  %v488_v55 = vld [vmem:[#allocation5 + $0x18] sm:$0xff] }
  0x45   : > { %765 = vmatpush3.msra.mxu1 %v399_v13  ;;  %534 = vmatpush1.msra.mxu0 %v511_v27  ;;  %v489_v54 = vld [vmem:[#allocation5 + $0x20] sm:$0xff]  ;;  %v487_v56 = vld [vmem:[#allocation5 + $0x10] sm:$0xff]  ;;  %v486_v57 = vld [vmem:[#allocation5 + $0x8] sm:$0xff] }
  0x46   : > { %766 = vmatprep.subr.mxu1 %v979_v0  ;;  %535 = vmatprep.subr.mxu0 %v510_v28  ;;  %v485_v58 = vld [vmem:[#allocation5] sm:$0xff] }
  0x47   : > { %767 = vmatpush3.msra.mxu1 %v398_v14  ;;  %536 = vmatpush1.msra.mxu0 %v509_v29  ;;  %v710_v59 = vld [vmem:[%s1198_s4] ss:$0 sm:$0xff] }
  0x48   : > { %768 = vmatprep.subr.mxu1 %v979_v0  ;;  %537 = vmatprep.subr.mxu0 %v508_v30  ;;  %v517_v3 = vld [vmem:[%s1200_s6] sm:$0x3] }
  0x49   : > { %769 = vmatpush3.msra.mxu1 %v397_v15  ;;  %538 = vmatpush1.msra.mxu0 %v507_v31 }
  0x4a   : > { %770 = vmatprep.subr.mxu1 %v979_v0  ;;  %539 = vmatprep.subr.mxu0 %v506_v32 }
  0x4b   : > { %771 = vmatpush3.msra.mxu1 %v396_v16  ;;  %540 = vmatpush1.msra.mxu0 %v505_v33 }
  0x4c   : > { %772 = vmatprep.subr.mxu1 %v979_v0  ;;  %541 = vmatprep.subr.mxu0 %v504_v34 }
  0x4d   : > { %773 = vmatpush3.msra.mxu1 %v395_v17  ;;  %542 = vmatpush1.msra.mxu0 %v503_v35 }
  0x4e   : > { %774 = vmatprep.subr.mxu1 %v979_v0  ;;  %543 = vmatprep.subr.mxu0 %v502_v36 }
  0x4f   : > { %775 = vmatpush3.msra.mxu1 %v394_v18  ;;  %544 = vmatpush1.msra.mxu0 %v501_v37 }
  0x50   : > { %776 = vmatprep.subr.mxu1 %v979_v0  ;;  %545 = vmatprep.subr.mxu0 %v500_v38 }
  0x51   : > { %777 = vmatpush3.msra.mxu1 %v393_v19  ;;  %546 = vmatpush1.msra.mxu0 %v499_v39 }
  0x52   : > { %778 = vmatprep.subr.mxu1 %v979_v0  ;;  %547 = vmatprep.subr.mxu0 %v498_v40 }
  0x53   : > { %779 = vmatpush3.msra.mxu1 %v392_v20  ;;  %548 = vmatpush1.msra.mxu0 %v497_v41 }
  0x54   : > { %780 = vmatprep.subr.mxu1 %v979_v0  ;;  %549 = vmatprep.subr.mxu0 %v496_v42  ;;  %v519_v0 = vlaneseq }
  0x55   : > { %781 = vmatpush3.msra.mxu1 %v391_v21  ;;  %550 = vmatpush1.msra.mxu0 %v495_v43 }
  0x56   : > { %551 = vmatprep.subr.mxu0 %v494_v44  ;;  %v520_v1 = vshrl.u32 %v519_v0, 7 }
  0x57   : > { %552 = vmatpush1.msra.mxu0 %v493_v45 }
  0x58   : > { %553 = vmatprep.subr.mxu0 %v492_v46  ;;  %v521_v2 = vsub.s32 0, %v520_v1  ;;  %v525_v4 = vsub.s32 1, %v520_v1 }
  0x59   : > { %554 = vmatpush1.msra.mxu0 %v491_v47 }
  0x5a   : > { %555 = vmatprep.subr.mxu0 %v490_v48  ;;  %v522_v5 = vrot.slane %v517_v3, %v521_v2  ;;  %v526_v6 = vrot.slane %v517_v3, %v525_v4 }
  0x5b   : > { %556 = vmatpush1.msra.mxu0 %v489_v54 }
  0x5c   : > { %557 = vmatprep.subr.mxu0 %v488_v55 }
  0x5d   : > { %558 = vmatpush1.msra.mxu0 %v487_v56 }
  0x5e   : > { %559 = vmatprep.subr.mxu0 %v486_v57 }
  0x5f   : > { %560 = vmatpush1.msra.mxu0 %v485_v58 }
  0xfe   : > { %v386_v50 = vpop.f32.mrf.mxu0 }
  0xff   : > { %v387_v51 = vadd.f32 %v708_v49, %v386_v50 }
 0x100   : > { %v749_v52 = vpop.f32.mrf.mxu0 }
 0x101   : > { %v390_v53 = vmax.f32 %v387_v51, 0.0 }
 0x103   : > { %783 = vmatmul.mubr.f32.vlgmr.msra.gmra.mxu1 %v390_v53 }
 0x1c3   : > { %v480_v60 = vpop.f32.mrf.mxu1 }
 0x1c4   : > { %v481_v61 = vadd.f32 %v710_v59, %v480_v60 }
 0x1c5   : > { %v784_v62 = vpop.f32.mrf.mxu1 }
 0x1c6   : > { %v484_v63 = vmax.f32 %v481_v61, 0.0 }
 0x1c8   : > { %594 = vmatmul.mubr.f32.vlgmr.msra.gmra.mxu0 %v484_v63 }
 0x288   : > { %v595_v7 = vpop.f32.mrf.mxu0 }
 0x289   : > { %v596_v8 = vadd.f32 %v595_v7, %v522_v5 }
 0x28a   : > { %v597_v9 = vpop.f32.mrf.mxu0 }
 0x28b   : > { %600 = vst [vmem:[%s299_s23] sm:$0xff] %v596_v8  ;;  %v598_v10 = vadd.f32 %v597_v9, %v526_v6 }
 0x28d   : > { %601 = vst [vmem:[%s299_s23 + $0x8] sm:$0xff] %v598_v10 }
 0x28e   : > { %916 = shalt.err (!%p913_p3)
}
 0x28f   : > { %s917_s19 = scalar_lea.hbm %s615_s14, 256  ;;  %s921_s21 = scalar_lea.hbm %s1201_s7, 512 }
 0x290   : > { %p918_p2 = scmp.ne.s32.totalorder %s615_s14, %s917_s19  ;;  %p922_p6 = scmp.lt.s32.totalorder %s615_s14, %s1201_s7 }
 0x291   : > { %p923_p9 = scmp.lt.s32.totalorder %s921_s21, %s917_s19 }
 0x292   : > { %p919_p4 = pnand %p918_p2, %p1060_p5 }
 0x293   : > { %p924_p7 = por %p923_p9, %p922_p6 }
 0x294   : > { %p920_p13 = pneg %p919_p4 }
 0x296   : > { %p925_p10 = pnand %p924_p7, %p920_p13 }
 0x298   : > { %928 = shalt.err (!%p925_p10)
}
 0x299   : > { %793 = dma.vmem_to_hbm [thread:$0]  (%p1060_p5), %s618_s29, 256, %s615_s14, %s603_s17  }
 0x29a PF: > { %p810_p12 = scmp.ge.s32.totalorder %s971_s27, 2  ;;  %s629_s8 = sand.u32 1, %s959_s24  }
 0x29b   : > { %p1211_p8 = scmp.ne.s32.totalorder %s1204_s12, 0  ;;  %s630_s9 = scalar_lea.sflag [#allocation4], %s629_s8 }
 0x29d   : > { %p803_p11 = pnand %p810_p12, %p1211_p8 }
 0x29f   : > { %p804_p0 = pneg %p803_p11 }
 0x2a1   : > { %954 = dma.done.wait (%p804_p0), %s630_s9, 256  }
 0x2a2   : > { %956 = vsyncadd (%p804_p0), %s630_s9, 4294967040  ;;  %p19_p1 = scmp.ge.s32.totalorder %s1047_s30, 4   ;;  %s1212_s24 = smov %s963_s25 }
 0x2a3   : > { %s1213_s25 = smov %s967_s26  ;;  %s1214_s26 = smov %s1058_s10 }
 0x2a4   : > { %s1215_s27 = smov %s1047_s30  ;;  %21 = sbr.rel (!%p19_p1) target bundleno = 5 (0x5), region = 92 }
 0x2a9   :  { %635 = vsyncpa [#allocation3], 1 }
 0x2aa   :  { %637 = vsyncpa [#allocation3 + $0x1], 1 }
 0x2ab   :  { %638 = vsyncpa [#allocation6], 1 }
 0x2ac   :  { %639 = vsyncpa [#allocation4], 1 }
 0x2ad   :  { %641 = vsyncpa [#allocation4 + $0x1], 1 }

</bundles_post_ra>
